<compile_context>
chip_gen: v7x
topology: tpu7x:2x2x1
jax: 0.10.0
libtpu: 0.0.40
codegen_flags: <defaults>
</compile_context>

<pallas_src>
import functools

import jax
import jax.numpy as jnp
from jax import lax
from jax.experimental import pallas as pl
from jax.experimental.pallas import tpu as pltpu

LN_EPS = 1e-5
_VMEM_LIMIT = 64 * 1024 * 1024


def _round_up(x, m):
    return (x + m - 1) // m * m


# ----------------------------- shared math (traced inside kernels) -----------

def _layer_norm(x, g, b):
    mu = jnp.mean(x, axis=-1, keepdims=True)
    var = jnp.mean(jnp.square(x - mu), axis=-1, keepdims=True)
    return (x - mu) * lax.rsqrt(var + LN_EPS) * g + b


def _gelu_new(x):
    # GPT-2 "gelu_new": 0.5*x*(1+tanh(sqrt(2/pi)*(x+0.044715*x^3)))
    return 0.5 * x * (1.0 + jnp.tanh(0.7978845608028654 * (x + 0.044715 * x * x * x)))


# ----------------------------- Pallas kernels --------------------------------

def linear_kernel(x_ref, w_ref, b_ref, o_ref):
    # x: (B, E) bf16, w: (E, D) bf16, b: (1, D) f32  ->  o: (B, D) bf16
    o_ref[...] = (
        jnp.dot(x_ref[...], w_ref[...], preferred_element_type=jnp.float32)
        + b_ref[...]
    ).astype(o_ref.dtype)


def gpt2_block_kernel(x_ref, ln1g_ref, ln1b_ref, wqkv_ref, bqkv_ref, wo_ref, bo_ref,
                      ln2g_ref, ln2b_ref, wfc_ref, bfc_ref, wpr_ref, bpr_ref,
                      o_ref, *, n_head):
    x = x_ref[0].astype(jnp.float32)                 # (T, D) residual stream, f32
    T, D = x.shape
    hd = D // n_head
    scale = 1.0 / (hd ** 0.5)

    # ---- attention (pre-LN) ----
    h = _layer_norm(x, ln1g_ref[...], ln1b_ref[...]).astype(jnp.bfloat16)
    qkv = (jnp.dot(h, wqkv_ref[...], preferred_element_type=jnp.float32)
           + bqkv_ref[...]).astype(jnp.bfloat16)     # (T, 3D)

    def stack_heads(base):
        # (H, T, hd) -- stack contiguous lane slices along a new leading axis
        parts = [qkv[None, :, base + i * hd: base + (i + 1) * hd]
                 for i in range(n_head)]
        return jnp.concatenate(parts, axis=0)

    qh = stack_heads(0)
    kh = stack_heads(D)
    vh = stack_heads(2 * D)

    # Batched QK^T over the heads axis (single dot_general, f32 accumulation).
    s = jnp.einsum("hqd,hkd->hqk", qh, kh,
                   preferred_element_type=jnp.float32) * scale       # (H, T, T)
    row = lax.broadcasted_iota(jnp.int32, (T, T), 0)
    col = lax.broadcasted_iota(jnp.int32, (T, T), 1)
    s = jnp.where((row >= col)[None], s, jnp.finfo(jnp.float32).min)

    m = jnp.max(s, axis=-1, keepdims=True)
    e = jnp.exp(s - m)
    denom = jnp.sum(e, axis=-1, keepdims=True)
    p = (e * pl.reciprocal(denom, approx=True)).astype(jnp.bfloat16)  # (H, T, T)

    heads = jnp.einsum("hqk,hkd->hqd", p, vh,
                       preferred_element_type=jnp.float32)            # (H, T, hd)
    # Reassemble (T, D) head-major along lanes, then ONE K=D output projection.
    attn = jnp.concatenate([heads[i] for i in range(n_head)], axis=-1)
    attn = jnp.dot(attn.astype(jnp.bfloat16), wo_ref[...],
                   preferred_element_type=jnp.float32) + bo_ref[...]
    x = x + attn

    # ---- MLP (pre-LN) ----
    h2 = _layer_norm(x, ln2g_ref[...], ln2b_ref[...]).astype(jnp.bfloat16)
    ff = jnp.dot(h2, wfc_ref[...], preferred_element_type=jnp.float32) + bfc_ref[...]
    ff = _gelu_new(ff).astype(jnp.bfloat16)
    ff = jnp.dot(ff, wpr_ref[...], preferred_element_type=jnp.float32) + bpr_ref[...]

    o_ref[0] = (x + ff).astype(o_ref.dtype)


def lm_head_kernel(x_ref, g_ref, b_ref, wte_ref, o_ref):
    # Final LayerNorm + weight-tied LM head on one vocab tile.
    # x: (1, T, D) bf16, wte tile: (TILE_V, D) bf16 -> logits (1, T, TILE_V) f32.
    h = _layer_norm(x_ref[0].astype(jnp.float32),
                    g_ref[...], b_ref[...]).astype(jnp.bfloat16)
    o_ref[0] = lax.dot_general(h, wte_ref[...], (((1,), (1,)), ((), ())),
                               preferred_element_type=jnp.float32)


# ----------------------------- pallas_call wrappers ---------------------------

def _const_spec(a):
    # Full-array block whose block index never changes across the grid.
    return pl.BlockSpec(a.shape, lambda *_, n=a.ndim: (0,) * n)


def run_linear(x, w, b):
    B = x.shape[0]
    D = w.shape[1]
    return pl.pallas_call(
        linear_kernel,
        out_shape=jax.ShapeDtypeStruct((B, D), jnp.bfloat16),
    )(x, w, b)


def run_block(x, layer_params, n_head):
    B, T, D = x.shape
    in_specs = [pl.BlockSpec((1, T, D), lambda i: (i, 0, 0))]
    in_specs += [_const_spec(p) for p in layer_params]
    return pl.pallas_call(
        functools.partial(gpt2_block_kernel, n_head=n_head),
        out_shape=jax.ShapeDtypeStruct((B, T, D), jnp.bfloat16),
        grid=(B,),
        in_specs=in_specs,
        out_specs=pl.BlockSpec((1, T, D), lambda i: (i, 0, 0)),
        compiler_params=pltpu.CompilerParams(
            dimension_semantics=("parallel",),
            vmem_limit_bytes=_VMEM_LIMIT),
    )(x, *layer_params)


def run_lm_head(x, g, b, wte_pad, tile_v):
    B, T, D = x.shape
    v_pad = wte_pad.shape[0]
    n_v = v_pad // tile_v
    return pl.pallas_call(
        lm_head_kernel,
        out_shape=jax.ShapeDtypeStruct((B, T, v_pad), jnp.float32),
        grid=(B, n_v),
        in_specs=[pl.BlockSpec((1, T, D), lambda bi, vi: (bi, 0, 0)),
                  pl.BlockSpec(g.shape, lambda bi, vi: (0, 0)),
                  pl.BlockSpec(b.shape, lambda bi, vi: (0, 0)),
                  pl.BlockSpec((tile_v, D), lambda bi, vi: (vi, 0))],
        out_specs=pl.BlockSpec((1, T, tile_v), lambda bi, vi: (bi, 0, vi)),
        compiler_params=pltpu.CompilerParams(
            dimension_semantics=("parallel", "parallel"),
            vmem_limit_bytes=_VMEM_LIMIT),
    )(x, g, b, wte_pad)


# ----------------------------- full model forward ----------------------------

def gpt2_decoder_forward(params, features, captions, *, n_head):
    # features: (B, embed_size) f32, captions: (B, T_cap) int32
    feat = run_linear(features.astype(jnp.bfloat16),
                      params["lin_w"], params["lin_b"])                # (B, D) bf16
    tok = jnp.take(params["wte"], captions, axis=0)                    # (B, Tc, D) bf16
    x = jnp.concatenate([feat[:, None, :], tok], axis=1)               # (B, T, D)
    T = x.shape[1]
    x = x + params["wpe"][:T][None]                                    # position emb
    # TODO(synk): dropout is identity in eval mode, so it is omitted.
    for layer in params["blocks"]:
        x = run_block(x, layer, n_head)
    logits = run_lm_head(x, params["lnf_g"], params["lnf_b"],
                         params["wte"], params["tile_v"])              # (B, T, V_pad)
    return logits[:, :, :params["vocab_size"]]


# ----------------------------- pure-JAX reference ----------------------------

def _ref_forward(params, features, captions, *, n_head):
    bf16 = jnp.bfloat16
    feat = (jnp.dot(features.astype(bf16), params["lin_w"],
                    preferred_element_type=jnp.float32)
            + params["lin_b"]).astype(bf16)
    tok = jnp.take(params["wte"], captions, axis=0)
    x = jnp.concatenate([feat[:, None, :], tok], axis=1)
    B, T, D = x.shape
    hd = D // n_head
    scale = 1.0 / (hd ** 0.5)
    x = x + params["wpe"][:T][None]
    causal = jnp.tril(jnp.ones((T, T), bool))
    for (g1, b1, wqkv, bqkv, wo, bo, g2, b2, wfc, bfc, wpr, bpr) in params["blocks"]:
        xf = x.astype(jnp.float32)
        h = _layer_norm(xf, g1, b1).astype(bf16)
        qkv = (jnp.einsum("btd,de->bte", h, wqkv,
                          preferred_element_type=jnp.float32) + bqkv).astype(bf16)
        split = lambda a: a.reshape(B, T, n_head, hd).transpose(0, 2, 1, 3)
        qh, kh, vh = split(qkv[..., :D]), split(qkv[..., D:2 * D]), split(qkv[..., 2 * D:])
        s = jnp.einsum("bhqd,bhkd->bhqk", qh, kh,
                       preferred_element_type=jnp.float32) * scale
        s = jnp.where(causal, s, jnp.finfo(jnp.float32).min)
        m = s.max(-1, keepdims=True)
        e = jnp.exp(s - m)
        p = (e / e.sum(-1, keepdims=True)).astype(bf16)
        a = jnp.einsum("bhqk,bhkd->bhqd", p, vh,
                       preferred_element_type=jnp.float32)
        a = a.transpose(0, 2, 1, 3).reshape(B, T, D)
        attn = jnp.einsum("btd,de->bte", a.astype(bf16), wo,
                          preferred_element_type=jnp.float32) + bo
        xf = xf + attn
        h2 = _layer_norm(xf, g2, b2).astype(bf16)
        ff = jnp.einsum("btd,df->btf", h2, wfc,
                        preferred_element_type=jnp.float32) + bfc
        ff = _gelu_new(ff).astype(bf16)
        ff = jnp.einsum("btf,fd->btd", ff, wpr,
                        preferred_element_type=jnp.float32) + bpr
        x = (xf + ff).astype(bf16)
    h = _layer_norm(x.astype(jnp.float32),
                    params["lnf_g"], params["lnf_b"]).astype(bf16)
    wte = params["wte"][:params["vocab_size"]]
    return jnp.einsum("btd,vd->btv", h, wte, preferred_element_type=jnp.float32)


# ----------------------------- parameter init --------------------------------

def init_params(key, *, embed_size, n_embd, vocab_size, n_layer, n_positions):
    ks = iter(jax.random.split(key, 8 + 12 * n_layer))

    def nrm(shape, s=0.02, dtype=jnp.float32):
        return (s * jax.random.normal(next(ks), shape, jnp.float32)).astype(dtype)

    D = n_embd
    bf16 = jnp.bfloat16

    # LM-head vocab tiling: pad vocab to a lane-dense (multiple-of-128) tile grid.
    target_tile_v = 2048
    if vocab_size <= target_tile_v:
        tile_v = _round_up(vocab_size, 128)
        v_pad = tile_v
    else:
        tile_v = target_tile_v
        v_pad = _round_up(vocab_size, tile_v)

    wte = nrm((vocab_size, D), dtype=bf16)
    wte_pad = jnp.zeros((v_pad, D), bf16).at[:vocab_size].set(wte)

    params = {
        # torch Linear(embed_size, n_embd): stored as W^T so y = x @ lin_w + lin_b
        "lin_w": nrm((embed_size, D), dtype=bf16),
        "lin_b": nrm((1, D)),
        "wte": wte_pad,                     # padded, weight-tied with the LM head
        "wpe": nrm((n_positions, D), dtype=bf16),
        "lnf_g": 1.0 + nrm((1, D), 0.1),
        "lnf_b": nrm((1, D)),
        "blocks": [],
        "vocab_size": vocab_size,
        "tile_v": tile_v,
    }
    for _ in range(n_layer):
        params["blocks"].append((
            1.0 + nrm((1, D), 0.1), nrm((1, D)),              # ln_1 gamma, beta
            nrm((D, 3 * D), dtype=bf16), nrm((1, 3 * D)),     # attn.c_attn
            nrm((D, D), dtype=bf16), nrm((1, D)),             # attn.c_proj
            1.0 + nrm((1, D), 0.1), nrm((1, D)),              # ln_2 gamma, beta
            nrm((D, 4 * D), dtype=bf16), nrm((1, 4 * D)),     # mlp.c_fc
            nrm((4 * D, D), dtype=bf16), nrm((1, D)),         # mlp.c_proj
        ))
    return params


# ----------------------------- main -------------------------------------------

if __name__ == "__main__":
    B, EMBED, D, N_HEAD, N_LAYER, VOCAB, T_CAP, N_POS = 2, 16, 32, 2, 2, 50, 8, 16

    key = jax.random.PRNGKey(0)
    kp, kf, kc = jax.random.split(key, 3)
    params = init_params(kp, embed_size=EMBED, n_embd=D, vocab_size=VOCAB,
                         n_layer=N_LAYER, n_positions=N_POS)

    features = jax.random.normal(kf, (B, EMBED), jnp.float32)
    captions = jax.random.randint(kc, (B, T_CAP), 0, VOCAB, jnp.int32)

    logits = gpt2_decoder_forward(params, features, captions, n_head=N_HEAD)
    logits = jax.block_until_ready(logits)
    assert logits.shape == (B, T_CAP + 1, VOCAB), logits.shape

    ref = jax.block_until_ready(_ref_forward(params, features, captions, n_head=N_HEAD))
    err = float(jnp.max(jnp.abs(logits - ref)))
    scale = float(jnp.max(jnp.abs(ref))) + 1.0
    assert err < 2e-2 * scale, f"mismatch: max abs err {err}"

    print("KERNEL_OK")
</pallas_src>

<mosaic_0001>
module attributes {stable_mosaic.version = 11 : i64} {
  func.func @linear_kernel(%arg0: memref<2x16xbf16, #tpu.memory_space<vmem>>, %arg1: memref<16x32xbf16, #tpu.memory_space<vmem>>, %arg2: memref<1x32xf32, #tpu.memory_space<vmem>>, %arg3: memref<2x32xbf16, #tpu.memory_space<vmem>>) attributes {dimension_semantics = [], scalar_prefetch = 0 : i64, scratch_operands = 0 : i64, tpu.core_type = #tpu.core_type<tc>} {
    %c0 = arith.constant 0 : index
    %c0_0 = arith.constant 0 : index
    %0 = vector.load %arg0[%c0, %c0_0] : memref<2x16xbf16, #tpu.memory_space<vmem>>, vector<2x16xbf16>
    %c0_1 = arith.constant 0 : index
    %c0_2 = arith.constant 0 : index
    %1 = vector.load %arg1[%c0_1, %c0_2] : memref<16x32xbf16, #tpu.memory_space<vmem>>, vector<16x32xbf16>
    %cst = arith.constant dense<0.000000e+00> : vector<2x32xf32>
    %2 = tpu.matmul %0, %1, %cst {dimension_numbers = #tpu.dot_dimension_numbers<[1], [0], [0], [1], [0, 0, 1, 1], [], []>} : vector<2x16xbf16>, vector<16x32xbf16>, vector<2x32xf32> -> vector<2x32xf32>
    %c0_3 = arith.constant 0 : index
    %c0_4 = arith.constant 0 : index
    %3 = vector.load %arg2[%c0_3, %c0_4] : memref<1x32xf32, #tpu.memory_space<vmem>>, vector<1x32xf32>
    %4 = vector.broadcast %3 : vector<1x32xf32> to vector<2x32xf32>
    %5 = arith.addf %2, %4 : vector<2x32xf32>
    %6 = arith.truncf %5 : vector<2x32xf32> to vector<2x32xbf16>
    %c0_5 = arith.constant 0 : index
    %c0_6 = arith.constant 0 : index
    %7 = vector.load %arg3[%c0_5, %c0_6] : memref<2x32xbf16, #tpu.memory_space<vmem>>, vector<2x32xbf16>
    tpu.vector_store %arg3[%c0_5, %c0_6], %6 {strides = array<i32>} : memref<2x32xbf16, #tpu.memory_space<vmem>>, vector<2x32xbf16>,
    return
  }
}

</mosaic_0001>

<bundles_post_ra>
// kernel: tpu_custom_call.1
= control target key start
LH: loop header
LB: loop body
LE: loop exit
PB: predicated region body
PF: predicated region fallthrough
CT: control target
= control target key end

     0   :  { %8 = vsyncpa [#allocation3], 0  ;;  %s285_s0 = inlined_call_operand.hbm [shape: bf16[2,16], index: 0, kind: input, shape index: {}]   ;;  %s286_s1 = inlined_call_operand.hbm [shape: bf16[16,32], index: 1, kind: input, shape index: {}]   ;;  %s287_s2 = inlined_call_operand.vmem [shape: f32[1,32], index: 2, kind: input, shape index: {}]   ;;  %s288_s3 = inlined_call_operand.hbm [shape: bf16[2,32], index: 3, kind: output, shape index: {}]  }
   0x1   :  { %9 = vsyncpa [#allocation6], 0 }
   0x2   :  { %10 = vsyncpa [#allocation4], 0  ;;  %s212_s12 = smov [#allocation2]   ;;  %s213_s14 = smov [#allocation5]  }
   0x3   :  { %s17_s13 = sshll.u32 %s212_s12, 4  ;;  %s26_s15 = sshll.u32 %s213_s14, 4  ;;  %s18_s13 = int_to_ptr.vmem [resolvable:$true] %s17_s13  ;;  %s239_s15 = int_to_ptr.vmem [resolvable:$true] %s26_s15 }
   0x4   :  { %s140_s18 = scalar_lea.hbm %s285_s0, 16 }
   0x5   :  { %p141_p0 = scmp.ne.s32.totalorder %s285_s0, %s140_s18  ;;  %p144_p1 = scmp.lt.u32.totalorder %s140_s18, %s285_s0 }
   0x7   :  { %p146_p2 = pnand %p144_p1, %p141_p0 }
   0x9   :  { %149 = shalt.err (!%p146_p2)
}
   0xa   :  { %s150_s23 = scalar_lea.vmem %s18_s13, 16  ;;  %s154_s24 = scalar_lea.vmem %s18_s13, 32 }
   0xb   :  { %p151_p3 = scmp.ne.s32.totalorder %s18_s13, %s150_s23  ;;  %p155_p4 = scmp.lt.s32.totalorder %s18_s13, %s18_s13 }
   0xc   :  { %p156_p5 = scmp.lt.s32.totalorder %s154_s24, %s150_s23 }
   0xe   :  { %p157_p6 = por %p156_p5, %p155_p4 }
  0x10   :  { %p158_p7 = pnand %p157_p6, %p151_p3 }
  0x12   :  { %161 = shalt.err (!%p158_p7)
}
  0x13   :  { %20 = dma.hbm_to_vmem [thread:$0]  %s285_s0, 16, %s18_s13, [#allocation3]  }
  0x14   :  { %s162_s29 = scalar_lea.hbm %s286_s1, 128 }
  0x15   :  { %p163_p8 = scmp.ne.s32.totalorder %s286_s1, %s162_s29  ;;  %p166_p9 = scmp.lt.u32.totalorder %s162_s29, %s286_s1 }
  0x17   :  { %p168_p10 = pnand %p166_p9, %p163_p8 }
  0x19   :  { %171 = shalt.err (!%p168_p10)
}
  0x1a   :  { %s172_s7 = scalar_lea.vmem %s239_s15, 128  ;;  %p177_p12 = scmp.lt.s32.totalorder %s239_s15, %s239_s15 }
  0x1b   :  { %p173_p11 = scmp.ne.s32.totalorder %s239_s15, %s172_s7  ;;  %p178_p13 = scmp.lt.s32.totalorder %s172_s7, %s172_s7 }
  0x1d   :  { %p179_p0 = por %p178_p13, %p177_p12 }
  0x1f   :  { %p180_p1 = pnand %p179_p0, %p173_p11 }
  0x21   :  { %183 = shalt.err (!%p180_p1)
}
  0x22   :  { %s214_s0 = smov 64   ;;  %s215_s8 = smov 4  }
  0x23   :  { %32 = dma.hbm_to_vmem [thread:$0]  %s286_s1, 128, %s239_s15, [#allocation6], %s214_s0, %s214_s0, %s215_s8  }
  0x24   :  { %206 = dma.done.wait [#allocation3], 16  }
  0x25   :  { %207 = vsyncadd [#allocation3], 4294967280 }
  0x26   :  { %208 = dma.done.wait [#allocation6], 128  }
  0x27   :  { %209 = vsyncadd [#allocation6], 4294967168  ;;  %v216_v0 = vmov 0.0   ;;  %vm217_vm0 = vmmov 0   ;;  %v139_v1 = vld [vmem:[#allocation5] sm:$0xff]   ;;  %vm58_vm1 = vcmask 130048  }
  0x28   :  { %126 = vmatprep.subr.bf16.mxu0 %v216_v0  ;;  %128 = vmatprep.mubr.msk.bf16.mxu0 %vm217_vm0, %v216_v0  ;;  %v42_v2 = vld [vmem:[#allocation2] sm:$0x1]  ;;  %s218_s13 = smov [#allocation7]   ;;  %vm103_vm2 = vcmask 253952  }
  0x29   :  { %127 = vmatpush3.bf16.msra.mxu0 %v139_v1  ;;  %v121_v3 = vld [vmem:[%s287_s2] ss:$0 sm:$0xff]  ;;  %s111_s1 = sshll.u32 %s218_s13, 4  ;;  %s112_s1 = int_to_ptr.vmem [resolvable:$true] %s111_s1 }
  0x2a   :  { %s184_s14 = scalar_lea.vmem %s112_s1, 16  ;;  %s188_s15 = scalar_lea.vmem %s112_s1, 32 }
  0x2b   :  { %p185_p2 = scmp.ne.s32.totalorder %s112_s1, %s184_s14  ;;  %p189_p3 = scmp.lt.s32.totalorder %s112_s1, %s112_s1 }
  0x2c   :  { %129 = vmatmul.mubr.msk.bf16.vlgmr.msra.gmra.mrb[0].mxu0 %vm58_vm1, %v42_v2  ;;  %p190_p4 = scmp.lt.s32.totalorder %s188_s15, %s184_s14 }
  0x2e   :  { %p191_p5 = por %p190_p4, %p189_p3 }
  0x30   :  { %p192_p6 = pnand %p191_p5, %p185_p2 }
  0xff   :  { %v96_v4 = vpop.f32.mrb[0].mxu0 }
 0x100   :  { %v97_v5 = vadd.f32 %v121_v3, %v96_v4  ;;  %v130_v6 = vpop.f32.mrb[1].mxu0 }
 0x101   :  { %v99_v7 = vpop.f32.mrb[2].mxu0 }
 0x102   :  { %v102_v8 = vpack.c.bf16 %v97_v5, %v97_v5  ;;  %v131_v9 = vpop.f32.mrb[3].mxu0 }
 0x104   :  { %104 = vst.msk [vmem:[#allocation7] sm:$0x1] %vm103_vm2, %v102_v8 }
 0x105   :  { %195 = shalt.err (!%p192_p6)
}
 0x106   :  { %s196_s17 = scalar_lea.hbm %s288_s3, 16 }
 0x107   :  { %p197_p7 = scmp.ne.s32.totalorder %s288_s3, %s196_s17  ;;  %p200_p8 = scmp.lt.u32.totalorder %s196_s17, %s288_s3 }
 0x109   :  { %p202_p9 = pnand %p200_p8, %p197_p7 }
 0x10b   :  { %205 = shalt.err (!%p202_p9)
}
 0x10c   :  { %114 = dma.vmem_to_hbm [thread:$0]  %s112_s1, 16, %s288_s3, [#allocation4]  }
 0x10d   :  { %210 = dma.done.wait [#allocation4], 16  }
 0x10e   :  { %211 = vsyncadd [#allocation4], 4294967280 }
 0x10f   :  { %118 = vsyncpa [#allocation3], 1 }
 0x110   :  { %119 = vsyncpa [#allocation6], 1 }
 0x111   :  { %120 = vsyncpa [#allocation4], 1 }

</bundles_post_ra>
